<compile_context>
chip_gen: v6e
topology: v6e:2x2x1
jax: 0.10.0
libtpu: 0.0.40
codegen_flags: <defaults>
</compile_context>

<pallas_src>
import jax
import jax.numpy as jnp
from jax.experimental import pallas as pl
from jax.experimental.pallas import tpu as pltpu


# ----------------------------------------------------------------------------
# Pallas kernel: one M-tile per grid step, full-K matmul + bias  ==  1x1 conv
# ----------------------------------------------------------------------------
def _conv1x1_kernel(x_ref, w_ref, b_ref, o_ref):
    # out = x @ w + b   (f32 operands, f32 MXU accumulation, f32 output)
    o_ref[...] = (
        jnp.dot(x_ref[...], w_ref[...], preferred_element_type=jnp.float32)
        + b_ref[...]
    ).astype(o_ref.dtype)


_TM_CANDIDATES = (2048, 1024, 512, 256, 128, 64, 32, 16, 8)


def _pick_tm(m):
    """Largest MXU/sublane-aligned M tile that is strictly < M.

    Keeping tm < M guarantees >= 2 grid steps, so the "parallel" M axis can
    shard across v7x's 2 TensorCores and double-buffering is always active.
    The 2048 cap keeps the f32 double-buffered working set ~10.5 MiB, safe on
    every generation (v5e 16 MiB default scoped VMEM up to v7x 64 MiB phys).
    """
    if m <= 8:
        return m  # tiny M: single full-extent tile (block == full dim)
    for cand in _TM_CANDIDATES:
        if cand < m:
            return cand
    return m


def _round_up(x, mult):
    return ((x + mult - 1) // mult) * mult


def conv1x1_pallas(x_flat, w_t, bias):
    """x_flat: (M, C_in) f32, w_t: (C_in, C_out) f32, bias: (C_out,) f32.

    Returns (M, C_out_padded) f32 with C_out_padded = round_up(C_out, 128);
    columns beyond C_out are zero.  Caller slices (or consumes padded width).
    """
    m, k = x_flat.shape
    k2, n = w_t.shape
    assert k == k2

    # Lane-dense output: pad C_out to a multiple of 128 so the store path is
    # unmasked vst instead of masked partial stores.
    n_pad = _round_up(n, 128)
    if n_pad != n:
        w_t = jnp.pad(w_t, ((0, 0), (0, n_pad - n)))           # tiny, one-time
        bias = jnp.pad(bias, (0, n_pad - n))
    bias2d = bias.astype(jnp.float32).reshape(1, n_pad)
    w_t = w_t.astype(jnp.float32)
    x_flat = x_flat.astype(jnp.float32)   # no-op for f32 inputs; no extra pass

    tm = _pick_tm(m)
    grid = (pl.cdiv(m, tm),)

    # Working set (tm=2048, K=512, n_pad=128, f32):
    #   2 * tm*K*4 (x, double-buffered)   = 8.0 MiB
    #   2 * tm*n_pad*4 (out, dbl-buf)     = 2.0 MiB
    #   K*n_pad*4 + n_pad*4 (resident w,b)= 0.25 MiB
    # ~10.5 MiB total -> 32 MiB scoped limit is safe on v5e/v6e/v7x.
    vmem_limit = 32 * 1024 * 1024

    return pl.pallas_call(
        _conv1x1_kernel,
        out_shape=jax.ShapeDtypeStruct((m, n_pad), jnp.float32),
        grid=grid,
        in_specs=[
            # NOTE: sweep pipeline_mode=pl.Buffered(3) here if DMA issue
            # latency at tile boundaries ever shows up; default (2) is fine.
            pl.BlockSpec((tm, k), lambda i: (i, 0)),      # x tile: rows i, all C_in
            pl.BlockSpec((k, n_pad), lambda i: (0, 0)),   # full weight, resident
            pl.BlockSpec((1, n_pad), lambda i: (0, 0)),   # bias, resident
        ],
        out_specs=pl.BlockSpec((tm, n_pad), lambda i: (i, 0)),
        compiler_params=pltpu.CompilerParams(
            dimension_semantics=("parallel",),
            vmem_limit_bytes=vmem_limit,
        ),
    )(x_flat, w_t, bias2d)


# ----------------------------------------------------------------------------
# Encoder.final_conv forward
# ----------------------------------------------------------------------------
def encoder_final_conv_nhwc(features_nhwc, conv_weight, conv_bias):
    """Channels-last hot path (no transposes, metadata-only reshapes).

    features_nhwc: (N, H, W, C_in)   conv_weight: (C_out, C_in, 1, 1)
    conv_bias: (C_out,)   ->  (N, H, W, C_out)   (== nn.Conv2d(C_in, C_out, 1))
    """
    n, h, w, c_in = features_nhwc.shape
    c_out = conv_weight.shape[0]
    x_flat = features_nhwc.reshape(n * h * w, c_in)      # metadata only
    w_t = conv_weight.reshape(c_out, c_in).T             # (C_in, C_out), tiny
    out_flat = conv1x1_pallas(x_flat, w_t, conv_bias)    # (M, C_out padded to 128)
    if out_flat.shape[1] != c_out:
        # One slice outside the kernel; drop this if the downstream consumer
        # (e.g. VQ codebook lookup) can take the 128-lane-padded embedding.
        out_flat = out_flat[:, :c_out]
    return out_flat.reshape(n, h, w, c_out)              # metadata only


def encoder_final_conv(features_nchw, conv_weight, conv_bias):
    """NCHW adapter matching torch's nn.Conv2d interface.  Layout conversion
    happens once at the module boundary; the Pallas hot path is channels-last."""
    x_nhwc = jnp.transpose(features_nchw, (0, 2, 3, 1))
    out_nhwc = encoder_final_conv_nhwc(x_nhwc, conv_weight, conv_bias)
    return jnp.transpose(out_nhwc, (0, 3, 1, 2))


if __name__ == "__main__":
    key = jax.random.PRNGKey(0)
    k_feat, k_w, k_b = jax.random.split(key, 3)

    # Shapes consistent with the module: an input image of (2, 3, 128, 128)
    # through resnet18 features_only stage -1 gives last_channels=512 at
    # stride 32 -> 4x4 feature map.  Kept channels-last end-to-end.
    batch, fh, fw, last_channels = 2, 4, 4, 512
    embedding_dim = 64

    # Synthetic stand-in for backbone(x)[-1] (backbone not translated).
    features_nhwc = jax.random.normal(
        k_feat, (batch, fh, fw, last_channels), dtype=jnp.float32
    )

    # Deterministic init of final_conv = nn.Conv2d(512, embedding_dim, 1)
    # (PyTorch default: uniform(-1/sqrt(fan_in), 1/sqrt(fan_in))).
    bound = 1.0 / jnp.sqrt(jnp.float32(last_channels))
    conv_weight = jax.random.uniform(
        k_w, (embedding_dim, last_channels, 1, 1), jnp.float32, -bound, bound
    )
    conv_bias = jax.random.uniform(
        k_b, (embedding_dim,), jnp.float32, -bound, bound
    )

    # Hot path: channels-last, no transposes, f32 end-to-end.
    out = jax.jit(encoder_final_conv_nhwc)(features_nhwc, conv_weight, conv_bias)
    out = jax.block_until_ready(out)

    # Reference (plain JAX, f32).
    ref = (
        jnp.einsum(
            "nhwc,oc->nhwo",
            features_nhwc,
            conv_weight.reshape(embedding_dim, last_channels),
        )
        + conv_bias[None, None, None, :]
    )
    assert out.shape == (batch, fh, fw, embedding_dim)
    assert jnp.allclose(out, ref, atol=1e-2, rtol=1e-2)

    # NCHW adapter parity with the torch module interface.
    features_nchw = jnp.transpose(features_nhwc, (0, 3, 1, 2))
    out_nchw = jax.block_until_ready(
        jax.jit(encoder_final_conv)(features_nchw, conv_weight, conv_bias)
    )
    assert out_nchw.shape == (batch, embedding_dim, fh, fw)
    assert jnp.allclose(
        out_nchw, jnp.transpose(ref, (0, 3, 1, 2)), atol=1e-2, rtol=1e-2
    )

    print("KERNEL_OK")
</pallas_src>

<mosaic_0001>
module attributes {stable_mosaic.version = 11 : i64} {
  func.func @_conv1x1_kernel(%arg0: i32, %arg1: memref<16x512xf32, #tpu.memory_space<vmem>>, %arg2: memref<512x128xf32, #tpu.memory_space<vmem>>, %arg3: memref<1x128xf32, #tpu.memory_space<vmem>>, %arg4: memref<16x128xf32, #tpu.memory_space<vmem>>) attributes {dimension_semantics = [#tpu.dimension_semantics<parallel>], iteration_bounds = array<i64: 2>, scalar_prefetch = 0 : i64, scratch_operands = 0 : i64, tpu.core_type = #tpu.core_type<tc>, window_params = [{transform_indices = @transform_0, window_bounds = array<i64: 16, 512>}, {pipeline_mode = #tpu.pipeline_mode<synchronous>, transform_indices = @transform_1, window_bounds = array<i64: 512, 128>}, {pipeline_mode = #tpu.pipeline_mode<synchronous>, transform_indices = @transform_2, window_bounds = array<i64: 1, 128>}, {transform_indices = @transform_3, window_bounds = array<i64: 16, 128>}]} {
    %c0 = arith.constant 0 : index
    %c0_0 = arith.constant 0 : index
    %0 = vector.load %arg1[%c0, %c0_0] : memref<16x512xf32, #tpu.memory_space<vmem>>, vector<16x512xf32>
    %c0_1 = arith.constant 0 : index
    %c0_2 = arith.constant 0 : index
    %1 = vector.load %arg2[%c0_1, %c0_2] : memref<512x128xf32, #tpu.memory_space<vmem>>, vector<512x128xf32>
    %cst = arith.constant dense<0.000000e+00> : vector<16x128xf32>
    %2 = tpu.matmul %0, %1, %cst {dimension_numbers = #tpu.dot_dimension_numbers<[1], [0], [0], [1], [0, 0, 1, 1], [], []>} : vector<16x512xf32>, vector<512x128xf32>, vector<16x128xf32> -> vector<16x128xf32>
    %c0_3 = arith.constant 0 : index
    %c0_4 = arith.constant 0 : index
    %3 = vector.load %arg3[%c0_3, %c0_4] : memref<1x128xf32, #tpu.memory_space<vmem>>, vector<1x128xf32>
    %4 = vector.broadcast %3 : vector<1x128xf32> to vector<16x128xf32>
    %5 = arith.addf %2, %4 : vector<16x128xf32>
    %c0_5 = arith.constant 0 : index
    %c0_6 = arith.constant 0 : index
    %6 = vector.load %arg4[%c0_5, %c0_6] : memref<16x128xf32, #tpu.memory_space<vmem>>, vector<16x128xf32>
    tpu.vector_store %arg4[%c0_5, %c0_6], %5 {strides = array<i32>} : memref<16x128xf32, #tpu.memory_space<vmem>>, vector<16x128xf32>,
    return
  }
  func.func @transform_0(%arg0: i32) -> (i32, i32) {
    %c0_i32 = arith.constant 0 : i32
    %c0_i32_0 = arith.constant 0 : i32
    return %arg0, %c0_i32 : i32, i32
  }
  func.func @transform_1(%arg0: i32) -> (i32, i32) {
    %c0_i32 = arith.constant 0 : i32
    %c0_i32_0 = arith.constant 0 : i32
    %c0_i32_1 = arith.constant 0 : i32
    return %c0_i32, %c0_i32_0 : i32, i32
  }
  func.func @transform_2(%arg0: i32) -> (i32, i32) {
    %c0_i32 = arith.constant 0 : i32
    %c0_i32_0 = arith.constant 0 : i32
    %c0_i32_1 = arith.constant 0 : i32
    return %c0_i32, %c0_i32_0 : i32, i32
  }
  func.func @transform_3(%arg0: i32) -> (i32, i32) {
    %c0_i32 = arith.constant 0 : i32
    %c0_i32_0 = arith.constant 0 : i32
    return %arg0, %c0_i32 : i32, i32
  }
}

</mosaic_0001>

<bundles_post_ra>
// kernel: encoder_final_conv_nhwc.1
= control target key start
LH: loop header
LB: loop body
LE: loop exit
PB: predicated region body
PF: predicated region fallthrough
CT: control target
= control target key end

     0   :  { %8 = vsyncpa [#allocation3], 0  ;;  %s1019_s0 = inlined_call_operand.vmem [shape: f32[32,512], index: 0, kind: input, shape index: {}]   ;;  %s1020_s1 = inlined_call_operand.vmem [shape: f32[512,128], index: 1, kind: input, shape index: {}]   ;;  %s1021_s2 = inlined_call_operand.vmem [shape: f32[1,128], index: 2, kind: input, shape index: {}]   ;;  %s1022_s3 = inlined_call_operand.hbm [shape: f32[32,128], index: 3, kind: output, shape index: {}]  }
   0x1   :  { %10 = vsyncpa [#allocation3 + $0x1], 0  ;;  %s700_s12 = smov 0   ;;  %s702_s13 = smov 0  }
   0x2   :  { %s704_s14 = smov 0   ;;  %s706_s15 = smov 0  }
   0x3 LB: > { %s721_s16 = sadd.s32 4294967295, %s675_s15   ;;  %s482_s17 = sadd.s32 4294967294, %s675_s15   ;;  %s675_s15 = sphi %s706_s15, %s1029_s15   ;;  %s671_s14 = sphi %s704_s14, %s1028_s14   ;;  %s667_s13 = sphi %s702_s13, %s1027_s13   ;;  %s663_s12 = sphi %s700_s12, %s1026_s12  }
   0x4   : > { %s725_s18 = sadd.s32 1, %s675_s15   ;;  %s91_s19 = sadd.s32 1, %s671_s14 }
   0x5   : > { %s88_s20 = ssub.s32 %s675_s15, %s725_s18  ;;  %p101_p0 = scmp.ne.s32.totalorder %s671_s14, %s667_s13 }
   0x6   : > { %p89_p1 = scmp.eq.s32.totalorder %s88_s20, 0  ;;  %p102_p2 = scmp.eq.s32.totalorder %s721_s16, 1 }
   0x7   : > { %p107_p3 = scmp.ne.s32.totalorder %s667_s13, %s663_s12  ;;  %p108_p4 = scmp.eq.s32.totalorder %s482_s17, 1 }
   0x8   : > { %s736_s21 = scalar_select %p89_p1, %s671_s14, %s91_s19  }
   0x9   : > { %p738_p5 = por %p102_p2, %p101_p0  ;;  %p742_p6 = por %p108_p4, %p107_p3 }
   0xa   : > { %p485_p7 = scmp.ge.s32.totalorder %s675_s15, 1  ;;  %p142_p8 = scmp.lt.s32.totalorder %s675_s15, 3 }
   0xc   : > { %p143_p9 = pnand %p485_p7, %p142_p8 }
   0xd   : > { %s487_s30 = sshll.u32 (!%p143_p9), %s721_s16, 1  ;;  %s164_s7 = sand.u32 (!%p143_p9), 1, %s667_s13  }
   0xe   : > { %146 = sbr.rel (%p143_p9) target bundleno = 273 (0x111), region = 32  ;;  %p859_p10 = scmp.lt.s32.totalorder (!%p143_p9), %s487_s30, 3 }
   0xf   : > { %s486_s10 = sshll.u32 (!%p143_p9), %s164_s7, 4  ;;  %s497_s19 = sshll.u32 (!%p143_p9), %s721_s16, 8 }
  0x10   : > { %s166_s11 = scalar_lea.vmem (!%p143_p9), [#allocation2], %s486_s10  ;;  %s977_s27 = scalar_lea.hbm (!%p143_p9), %s1022_s3, %s497_s19 }
  0x11   : > { %s979_s28 = scalar_lea.sflag (!%p143_p9), [#allocation3], %s164_s7  ;;  %s677_s16 = smov (!%p143_p9), [#allocation2]  }
  0x13   : > { %v214_v0 = vld [vmem:[%s1020_s1 + $0xf8] sm:$0xff]  ;;  %v213_v4 = vld [vmem:[%s1020_s1 + $0xf0] sm:$0xff]  ;;  %v212_v8 = vld [vmem:[%s1020_s1 + $0xe8] sm:$0xff]  ;;  %s1031_s30 = smov (!%p859_p10, %s487_s30), 3 }
  0x14   : > { %v246_v1 = vld [vmem:[%s1020_s1 + $0x1f8] sm:$0xff]  ;;  %498 = vmatprep.subr.mxu0 %v214_v0  ;;  %v245_v5 = vld [vmem:[%s1020_s1 + $0x1f0] sm:$0xff]  ;;  %v244_v9 = vld [vmem:[%s1020_s1 + $0x1e8] sm:$0xff]  ;;  %s496_s24 = sshll.u32 %s1031_s30, 5 }
  0x15   : > { %v198_v2 = vld [vmem:[%s1020_s1 + $0x78] sm:$0xff]  ;;  %536 = vmatprep.subr.mxu1 %v246_v1  ;;  %v197_v6 = vld [vmem:[%s1020_s1 + $0x70] sm:$0xff]  ;;  %v196_v10 = vld [vmem:[%s1020_s1 + $0x68] sm:$0xff]  ;;  %s939_s17 = scalar_lea.vmem %s1019_s0, %s496_s24  ;;  %s619_s24 = sshll.u32 %s677_s16, 4  ;;  %s620_s24 = int_to_ptr.vmem [resolvable:$false] %s619_s24 }
  0x16   : > { %v230_v3 = vld [vmem:[%s1020_s1 + $0x178] sm:$0xff]  ;;  %499 = vmatpush3.msra.mxu0 %v198_v2  ;;  %v229_v7 = vld [vmem:[%s1020_s1 + $0x170] sm:$0xff]  ;;  %v228_v11 = vld [vmem:[%s1020_s1 + $0x168] sm:$0xff]  ;;  %s621_s4 = scalar_lea.vmem %s620_s24, 512 }
  0x17   : > { %537 = vmatpush3.msra.mxu1 %v230_v3  ;;  %500 = vmatprep.subr.mxu0 %v213_v4  ;;  %v211_v12 = vld [vmem:[%s1020_s1 + $0xe0] sm:$0xff]  ;;  %v210_v16 = vld [vmem:[%s1020_s1 + $0xd8] sm:$0xff]  ;;  %v209_v20 = vld [vmem:[%s1020_s1 + $0xd0] sm:$0xff] }
  0x18   : > { %538 = vmatprep.subr.mxu1 %v245_v5  ;;  %501 = vmatpush3.msra.mxu0 %v197_v6  ;;  %v243_v13 = vld [vmem:[%s1020_s1 + $0x1e0] sm:$0xff]  ;;  %v242_v17 = vld [vmem:[%s1020_s1 + $0x1d8] sm:$0xff]  ;;  %v241_v21 = vld [vmem:[%s1020_s1 + $0x1d0] sm:$0xff] }
  0x19   : > { %539 = vmatpush3.msra.mxu1 %v229_v7  ;;  %502 = vmatprep.subr.mxu0 %v212_v8  ;;  %v195_v14 = vld [vmem:[%s1020_s1 + $0x60] sm:$0xff]  ;;  %v194_v18 = vld [vmem:[%s1020_s1 + $0x58] sm:$0xff]  ;;  %v193_v22 = vld [vmem:[%s1020_s1 + $0x50] sm:$0xff] }
  0x1a   : > { %540 = vmatprep.subr.mxu1 %v244_v9  ;;  %v227_v15 = vld [vmem:[%s1020_s1 + $0x160] sm:$0xff]  ;;  %503 = vmatpush3.msra.mxu0 %v196_v10  ;;  %v226_v19 = vld [vmem:[%s1020_s1 + $0x158] sm:$0xff]  ;;  %v225_v23 = vld [vmem:[%s1020_s1 + $0x150] sm:$0xff] }
  0x1b   : > { %541 = vmatpush3.msra.mxu1 %v228_v11  ;;  %504 = vmatprep.subr.mxu0 %v211_v12  ;;  %v208_v24 = vld [vmem:[%s1020_s1 + $0xc8] sm:$0xff]  ;;  %v207_v28 = vld [vmem:[%s1020_s1 + $0xc0] sm:$0xff]  ;;  %v206_v32 = vld [vmem:[%s1020_s1 + $0xb8] sm:$0xff] }
  0x1c   : > { %542 = vmatprep.subr.mxu1 %v243_v13  ;;  %505 = vmatpush3.msra.mxu0 %v195_v14  ;;  %v240_v25 = vld [vmem:[%s1020_s1 + $0x1c8] sm:$0xff]  ;;  %v239_v29 = vld [vmem:[%s1020_s1 + $0x1c0] sm:$0xff]  ;;  %v238_v33 = vld [vmem:[%s1020_s1 + $0x1b8] sm:$0xff] }
  0x1d   : > { %543 = vmatpush3.msra.mxu1 %v227_v15  ;;  %506 = vmatprep.subr.mxu0 %v210_v16  ;;  %v192_v26 = vld [vmem:[%s1020_s1 + $0x48] sm:$0xff]  ;;  %v191_v30 = vld [vmem:[%s1020_s1 + $0x40] sm:$0xff]  ;;  %v190_v34 = vld [vmem:[%s1020_s1 + $0x38] sm:$0xff] }
  0x1e   : > { %544 = vmatprep.subr.mxu1 %v242_v17  ;;  %507 = vmatpush3.msra.mxu0 %v194_v18  ;;  %v224_v27 = vld [vmem:[%s1020_s1 + $0x148] sm:$0xff]  ;;  %v223_v31 = vld [vmem:[%s1020_s1 + $0x140] sm:$0xff]  ;;  %v222_v35 = vld [vmem:[%s1020_s1 + $0x138] sm:$0xff] }
  0x1f   : > { %545 = vmatpush3.msra.mxu1 %v226_v19  ;;  %508 = vmatprep.subr.mxu0 %v209_v20  ;;  %v205_v36 = vld [vmem:[%s1020_s1 + $0xb0] sm:$0xff]  ;;  %v204_v40 = vld [vmem:[%s1020_s1 + $0xa8] sm:$0xff]  ;;  %v203_v44 = vld [vmem:[%s1020_s1 + $0xa0] sm:$0xff] }
  0x20   : > { %546 = vmatprep.subr.mxu1 %v241_v21  ;;  %509 = vmatpush3.msra.mxu0 %v193_v22  ;;  %v237_v37 = vld [vmem:[%s1020_s1 + $0x1b0] sm:$0xff]  ;;  %v236_v41 = vld [vmem:[%s1020_s1 + $0x1a8] sm:$0xff]  ;;  %v235_v45 = vld [vmem:[%s1020_s1 + $0x1a0] sm:$0xff] }
  0x21   : > { %547 = vmatpush3.msra.mxu1 %v225_v23  ;;  %510 = vmatprep.subr.mxu0 %v208_v24  ;;  %v189_v38 = vld [vmem:[%s1020_s1 + $0x30] sm:$0xff]  ;;  %v188_v42 = vld [vmem:[%s1020_s1 + $0x28] sm:$0xff]  ;;  %v187_v46 = vld [vmem:[%s1020_s1 + $0x20] sm:$0xff] }
  0x22   : > { %548 = vmatprep.subr.mxu1 %v240_v25  ;;  %511 = vmatpush3.msra.mxu0 %v192_v26  ;;  %v221_v39 = vld [vmem:[%s1020_s1 + $0x130] sm:$0xff]  ;;  %v220_v43 = vld [vmem:[%s1020_s1 + $0x128] sm:$0xff]  ;;  %v219_v47 = vld [vmem:[%s1020_s1 + $0x120] sm:$0xff] }
  0x23   : > { %549 = vmatpush3.msra.mxu1 %v224_v27  ;;  %512 = vmatprep.subr.mxu0 %v207_v28  ;;  %v202_v48 = vld [vmem:[%s1020_s1 + $0x98] sm:$0xff]  ;;  %v201_v52 = vld [vmem:[%s1020_s1 + $0x90] sm:$0xff]  ;;  %v200_v56 = vld [vmem:[%s1020_s1 + $0x88] sm:$0xff] }
  0x24   : > { %550 = vmatprep.subr.mxu1 %v239_v29  ;;  %513 = vmatpush3.msra.mxu0 %v191_v30  ;;  %v234_v49 = vld [vmem:[%s1020_s1 + $0x198] sm:$0xff]  ;;  %v233_v53 = vld [vmem:[%s1020_s1 + $0x190] sm:$0xff]  ;;  %v232_v57 = vld [vmem:[%s1020_s1 + $0x188] sm:$0xff] }
  0x25   : > { %551 = vmatpush3.msra.mxu1 %v223_v31  ;;  %514 = vmatprep.subr.mxu0 %v206_v32  ;;  %v186_v50 = vld [vmem:[%s1020_s1 + $0x18] sm:$0xff]  ;;  %v185_v54 = vld [vmem:[%s1020_s1 + $0x10] sm:$0xff]  ;;  %v184_v58 = vld [vmem:[%s1020_s1 + $0x8] sm:$0xff] }
  0x26   : > { %552 = vmatprep.subr.mxu1 %v238_v33  ;;  %515 = vmatpush3.msra.mxu0 %v190_v34  ;;  %v218_v51 = vld [vmem:[%s1020_s1 + $0x118] sm:$0xff]  ;;  %v217_v55 = vld [vmem:[%s1020_s1 + $0x110] sm:$0xff]  ;;  %v216_v59 = vld [vmem:[%s1020_s1 + $0x108] sm:$0xff] }
  0x27   : > { %553 = vmatpush3.msra.mxu1 %v222_v35  ;;  %516 = vmatprep.subr.mxu0 %v205_v36  ;;  %v199_v60 = vld [vmem:[%s1020_s1 + $0x80] sm:$0xff]  ;;  %v176_v63 = vld [vmem:[%s939_s17 + $0x8] sm:$0xff]  ;;  %v178_v1 = vld [vmem:[%s939_s17 + $0x18] sm:$0xff] }
  0x28   : > { %554 = vmatprep.subr.mxu1 %v237_v37  ;;  %517 = vmatpush3.msra.mxu0 %v189_v38  ;;  %v231_v61 = vld [vmem:[%s1020_s1 + $0x180] sm:$0xff]  ;;  %v177_v3 = vld [vmem:[%s939_s17 + $0x10] sm:$0xff]  ;;  %v180_v4 = vld [vmem:[%s939_s17 + $0x28] sm:$0xff] }
  0x29   : > { %555 = vmatpush3.msra.mxu1 %v221_v39  ;;  %518 = vmatprep.subr.mxu0 %v204_v40  ;;  %v183_v62 = vld [vmem:[%s1020_s1] sm:$0xff]  ;;  %v182_v5 = vld [vmem:[%s939_s17 + $0x38] sm:$0xff]  ;;  %v181_v7 = vld [vmem:[%s939_s17 + $0x30] sm:$0xff] }
  0x2a   : > { %556 = vmatprep.subr.mxu1 %v236_v41  ;;  %519 = vmatpush3.msra.mxu0 %v188_v42  ;;  %v215_v0 = vld [vmem:[%s1020_s1 + $0x100] sm:$0xff] }
  0x2b   : > { %557 = vmatpush3.msra.mxu1 %v220_v43  ;;  %520 = vmatprep.subr.mxu0 %v203_v44  ;;  %v175_v2 = vld [vmem:[%s939_s17] sm:$0xff] }
  0x2c   : > { %558 = vmatprep.subr.mxu1 %v235_v45  ;;  %521 = vmatpush3.msra.mxu0 %v187_v46  ;;  %v179_v6 = vld [vmem:[%s939_s17 + $0x20] sm:$0xff]  ;;  %s420_s17 = sshll.u32 %s166_s11, 4  ;;  %s972_s17 = int_to_ptr.vmem [resolvable:$true] %s420_s17 }
  0x2d   : > { %559 = vmatpush3.msra.mxu1 %v219_v47  ;;  %522 = vmatprep.subr.mxu0 %v202_v48  ;;  %v490_v10 = vld [vmem:[%s1021_s2] ss:$0 sm:$0xff]  ;;  %s615_s29 = scalar_lea.vmem %s972_s17, 256  ;;  %p622_p0 = scmp.lt.s32.totalorder %s972_s17, %s620_s24 }
  0x2e   : > { %560 = vmatprep.subr.mxu1 %v234_v49  ;;  %523 = vmatpush3.msra.mxu0 %v186_v50  ;;  %p616_p11 = scmp.ne.s32.totalorder %s972_s17, %s615_s29  ;;  %p623_p1 = scmp.lt.s32.totalorder %s621_s4, %s615_s29 }
  0x2f   : > { %561 = vmatpush3.msra.mxu1 %v218_v51  ;;  %524 = vmatprep.subr.mxu0 %v201_v52 }
  0x30   : > { %562 = vmatprep.subr.mxu1 %v233_v53  ;;  %525 = vmatpush3.msra.mxu0 %v185_v54  ;;  %p617_p12 = pnand %p616_p11, %p738_p5  ;;  %p624_p2 = por %p623_p1, %p622_p0 }
  0x31   : > { %563 = vmatpush3.msra.mxu1 %v217_v55  ;;  %526 = vmatprep.subr.mxu0 %v200_v56 }
  0x32   : > { %564 = vmatprep.subr.mxu1 %v232_v57  ;;  %527 = vmatpush3.msra.mxu0 %v184_v58  ;;  %p618_p13 = pneg %p617_p12 }
  0x33   : > { %565 = vmatpush3.msra.mxu1 %v216_v59  ;;  %528 = vmatprep.subr.mxu0 %v199_v60 }
  0x34   : > { %566 = vmatprep.subr.mxu1 %v231_v61  ;;  %529 = vmatpush3.msra.mxu0 %v183_v62  ;;  %p625_p3 = pnand %p624_p2, %p618_p13 }
  0x35   : > { %318 = vmatprep.mubr.f32.mxu0 %v176_v63  ;;  %567 = vmatpush3.msra.mxu1 %v215_v0 }
  0x36   : > { %393 = vmatprep.mubr.f32.mxu1 %v178_v1  ;;  %319 = vmatmul.mubr.f32.vlgmr.msra.gmra.mxu0 %v175_v2 }
  0x37   : > { %394 = vmatmul.mubr.f32.vlgmr.msra.gmra.mxu1 %v177_v3  ;;  %323 = vmatprep.mubr.f32.mxu0 %v180_v4 }
  0x38   : > { %398 = vmatprep.mubr.f32.mxu1 %v182_v5 }
  0x3a   : > { %324 = vmatmul.mubr.f32.gmra.mxu0 %v179_v6 }
  0x3b   : > { %399 = vmatmul.mubr.f32.gmra.mxu1 %v181_v7 }
  0xf6   : > { %v530_v8 = vpop.f32.mrf.mxu0 }
  0xf7   : > { %v568_v9 = vpop.f32.mrf.mxu1 }
  0xf8   : > { %v531_v11 = vpop.f32.mrf.mxu0 }
  0xf9   : > { %v569_v12 = vpop.f32.mrf.mxu1  ;;  %v532_v13 = vadd.f32 %v531_v11, %v530_v8 }
  0xfa   : > { %v533_v14 = vpop.f32.mrf.mxu0  ;;  %v570_v17 = vadd.f32 %v569_v12, %v568_v9 }
  0xfb   : > { %v571_v15 = vpop.f32.mrf.mxu1  ;;  %v321_v16 = vadd.f32 %v532_v13, %v490_v10 }
  0xfc   : > { %v534_v18 = vpop.f32.mrf.mxu0 }
  0xfd   : > { %v572_v19 = vpop.f32.mrf.mxu1  ;;  %v396_v20 = vadd.f32 %v570_v17, %v321_v16  ;;  %v535_v21 = vadd.f32 %v534_v18, %v533_v14 }
  0xfe   : > { %v573_v23 = vadd.f32 %v572_v19, %v571_v15 }
  0xff   : > { %404 = vst [vmem:[%s166_s11] sm:$0xff] %v396_v20  ;;  %v326_v22 = vadd.f32 %v535_v21, %v490_v10 }
 0x101   : > { %v401_v24 = vadd.f32 %v573_v23, %v326_v22 }
 0x103   : > { %405 = vst [vmem:[%s166_s11 + $0x8] sm:$0xff] %v401_v24 }
 0x104   : > { %628 = shalt.err (!%p625_p3)
}
 0x105   : > { %s629_s5 = scalar_lea.hbm %s977_s27, 256  ;;  %s633_s30 = scalar_lea.hbm %s1022_s3, 512 }
 0x106   : > { %p630_p4 = scmp.ne.s32.totalorder %s977_s27, %s629_s5  ;;  %p634_p9 = scmp.lt.s32.totalorder %s977_s27, %s1022_s3 }
 0x107   : > { %p635_p10 = scmp.lt.s32.totalorder %s633_s30, %s629_s5 }
 0x108   : > { %p631_p7 = pnand %p630_p4, %p738_p5 }
 0x109   : > { %p636_p11 = por %p635_p10, %p634_p9 }
 0x10a   : > { %p632_p8 = pneg %p631_p7 }
 0x10c   : > { %p637_p12 = pnand %p636_p11, %p632_p8 }
 0x10e   : > { %640 = shalt.err (!%p637_p12)
}
 0x10f   : > { %s678_s9 = smov 128   ;;  %s679_s10 = smov 8  }
 0x110   : > { %574 = dma.vmem_to_hbm [thread:$0]  (%p738_p5), %s972_s17, 256, %s977_s27, %s979_s28, %s678_s9, %s678_s9, %s679_s10  }
 0x111 PF: > { %p580_p13 = scmp.ge.s32.totalorder %s675_s15, 2  ;;  %s435_s11 = sand.u32 1, %s663_s12  }
 0x112   : > { %s436_s19 = scalar_lea.sflag [#allocation3], %s435_s11 }
 0x113   : > { %p577_p0 = pnand %p580_p13, %p742_p6 }
 0x115   : > { %p578_p1 = pneg %p577_p0 }
 0x117   : > { %658 = dma.done.wait (%p578_p1), %s436_s19, 256  }
 0x118   : > { %660 = vsyncadd (%p578_p1), %s436_s19, 4294967040  ;;  %p13_p2 = scmp.ge.s32.totalorder %s725_s18, 4   ;;  %s1026_s12 = smov %s667_s13 }
 0x119   : > { %s1027_s13 = smov %s671_s14  ;;  %s1028_s14 = smov %s736_s21 }
 0x11a   : > { %s1029_s15 = smov %s725_s18  ;;  %15 = sbr.rel (!%p13_p2) target bundleno = 3 (0x3), region = 67 }
 0x11f   :  { %441 = vsyncpa [#allocation3], 1 }
 0x120   :  { %443 = vsyncpa [#allocation3 + $0x1], 1 }

</bundles_post_ra>
